<compile_context>
chip_gen: v7x
topology: tpu7x:2x2x1
jax: 0.10.0
libtpu: 0.0.40
codegen_flags: <defaults>
</compile_context>

<pallas_src>
import functools

import numpy as np
import jax
import jax.numpy as jnp
from jax.experimental import pallas as pl
from jax.experimental.pallas import tpu as pltpu


# ------------------------------ Pallas kernel --------------------------------

def _shift_flat(v, d):
    """out[..., f] = v[..., f + d] along the last axis, zero-filled out of range."""
    if d == 0:
        return v
    fill = jnp.zeros(v.shape[:-1] + (abs(d),), v.dtype)
    if d > 0:
        return jnp.concatenate([v[..., d:], fill], axis=-1)
    return jnp.concatenate([fill, v[..., :d]], axis=-1)


def _sab_fused_kernel(x_ref, w_ref, b_ref, m_ref, o_ref, *, H, W, k):
    # x_ref: (C, H*W)    one image, channels on sublanes, flat spatial on lanes
    # w_ref: (C, 2*k*k)  conv weight, columns = [avg taps | max taps], tap = di*k+dj
    # b_ref: (C, 1)      conv bias
    # m_ref: (k*k, H*W)  0/1 border-validity mask per tap (resident constant)
    # o_ref: (C, H*W)
    p = k // 2
    kk = k * k
    C, HW = x_ref.shape

    xv = x_ref[...].astype(jnp.float32)

    # Channel-wise mean / max (sublane reduction), fused in-kernel.
    s_avg = jnp.mean(xv, axis=0, keepdims=True)          # (1, HW)
    s_max = jnp.max(xv, axis=0, keepdims=True)           # (1, HW)

    wv = w_ref[...]                                      # (C, 2*kk)

    # 2 -> C conv as an unrolled VPU FMA over the k*k taps.  For tap (di, dj)
    # the source pixel of output (i, j) is (i + di - p, j + dj - p), i.e. a
    # shift of d = oi*W + oj along the flattened spatial axis; pixels whose
    # source falls outside the image are zeroed by the resident tap mask
    # (this reproduces Conv2d's zero padding).
    attn = jnp.zeros((C, HW), jnp.float32)
    t = 0
    for oi in range(-p, p + 1):
        for oj in range(-p, p + 1):
            d = oi * W + oj
            sa = _shift_flat(s_avg, d)                   # (1, HW)
            sm = _shift_flat(s_max, d)                   # (1, HW)
            wa = wv[:, t:t + 1]                          # (C, 1)  avg-channel tap
            wm = wv[:, kk + t:kk + t + 1]                # (C, 1)  max-channel tap
            attn = attn + (wa * sa + wm * sm) * m_ref[t:t + 1, :]
            t += 1

    attn = attn + b_ref[...]                             # (C, 1) broadcast

    # Exact sigmoid keeps the 1e-5 check tight; flip approx=True to move the
    # divide onto the EUP slot (perf-neutral here: the kernel is HBM-bound).
    gate = pl.reciprocal(1.0 + jnp.exp(-attn), approx=False)

    o_ref[...] = (gate * xv + xv).astype(o_ref.dtype)


# ----------------------------- trace-time constants ---------------------------

def _build_tap_masks(H, W, k):
    """(k*k, H*W) 0/1 masks: tap (di,dj) valid where the shifted source pixel
    lies inside the image (replicates Conv2d zero padding).  Pure numpy,
    built once at trace time (H, W, k are static)."""
    p = k // 2
    f = np.arange(H * W)
    row, col = f // W, f % W
    masks = []
    for oi in range(-p, p + 1):
        for oj in range(-p, p + 1):
            ok = ((row + oi >= 0) & (row + oi < H) &
                  (col + oj >= 0) & (col + oj < W))
            masks.append(ok.astype(np.float32))
    return np.stack(masks, axis=0)


# -------------------------------- SAB forward ---------------------------------

@functools.partial(jax.jit, static_argnames=("k",))
def sab_forward(x_nchw, params, k=3):
    N, C, H, W = x_nchw.shape
    HW = H * W
    kk = k * k

    # Free relayout: (N, C, H, W) -> (N, C, H*W) keeps the same memory layout
    # but gives a lane-dense last dim (multiple of 128 here).
    x_flat = x_nchw.reshape(N, C, HW)

    # Conv weight (C, 2, k, k) -> (C, 2*k*k): [avg taps | max taps], tap = di*k+dj.
    w4 = params["w"].astype(jnp.float32)
    w_mat = jnp.concatenate(
        [w4[:, 0].reshape(C, kk), w4[:, 1].reshape(C, kk)], axis=1)
    b2 = params["b"].reshape(C, 1).astype(jnp.float32)
    masks = jnp.asarray(_build_tap_masks(H, W, k))        # (k*k, HW), ~k*k*HW*4 B

    kernel = functools.partial(_sab_fused_kernel, H=H, W=W, k=k)

    out_flat = pl.pallas_call(
        kernel,
        out_shape=jax.ShapeDtypeStruct((N, C, HW), x_nchw.dtype),
        grid=(N,),
        in_specs=[
            pl.BlockSpec((None, C, HW), lambda n: (n, 0, 0)),   # x, streamed
            pl.BlockSpec((C, 2 * kk), lambda n: (0, 0)),        # weight, resident
            pl.BlockSpec((C, 1), lambda n: (0, 0)),             # bias, resident
            pl.BlockSpec((kk, HW), lambda n: (0, 0)),           # tap masks, resident
        ],
        out_specs=pl.BlockSpec((None, C, HW), lambda n: (n, 0, 0)),
        compiler_params=pltpu.CompilerParams(
            dimension_semantics=("parallel",)),                 # megacore on v7x
    )(x_flat, w_mat, b2, masks)

    return out_flat.reshape(N, C, H, W)


# ------------------------------ pure-JAX reference ----------------------------

def ref_sab(x, params, k=3):
    p = k // 2
    avg = jnp.mean(x, axis=1, keepdims=True)
    mx = jnp.max(x, axis=1, keepdims=True)
    s = jnp.concatenate([avg, mx], axis=1)
    attn = jax.lax.conv_general_dilated(
        s, params["w"], (1, 1), [(p, p), (p, p)],
        dimension_numbers=("NCHW", "OIHW", "NCHW"))
    attn = attn + params["b"].reshape(1, -1, 1, 1)
    gate = jax.nn.sigmoid(attn)
    return gate * x + x


# ----------------------------------- main -------------------------------------

if __name__ == "__main__":
    key = jax.random.PRNGKey(0)
    n_feat, k = 4, 3              # SAB(n_feat=4, kernel_size=3, bias=True)
    B, H, W = 2, 16, 16

    kw, kb, kx = jax.random.split(key, 3)
    fan_in = 2 * k * k
    params = {
        # PyTorch Conv2d weight layout: (out_channels=n_feat, in_channels=2, k, k)
        "w": jax.random.normal(kw, (n_feat, 2, k, k), jnp.float32)
             / jnp.sqrt(jnp.float32(fan_in)),
        "b": jax.random.normal(kb, (n_feat,), jnp.float32) * 0.1,
    }
    x = jax.random.normal(kx, (B, n_feat, H, W), jnp.float32)

    out = jax.block_until_ready(sab_forward(x, params, k=k))
    ref = jax.block_until_ready(ref_sab(x, params, k=k))

    assert out.shape == x.shape, out.shape
    assert jnp.allclose(out, ref, rtol=1e-5, atol=1e-5), \
        f"max abs err {jnp.max(jnp.abs(out - ref))}"

    print("KERNEL_OK")
</pallas_src>

<mosaic_0001>
module attributes {stable_mosaic.version = 11 : i64} {
  func.func @_sab_fused_kernel(%arg0: i32, %arg1: memref<1x4x256xf32, #tpu.memory_space<vmem>>, %arg2: memref<4x18xf32, #tpu.memory_space<vmem>>, %arg3: memref<4x1xf32, #tpu.memory_space<vmem>>, %arg4: memref<9x256xf32, #tpu.memory_space<vmem>>, %arg5: memref<1x4x256xf32, #tpu.memory_space<vmem>>) attributes {dimension_semantics = [#tpu.dimension_semantics<parallel>], iteration_bounds = array<i64: 2>, scalar_prefetch = 0 : i64, scratch_operands = 0 : i64, tpu.core_type = #tpu.core_type<tc>, window_params = [{transform_indices = @transform_0, window_bounds = array<i64: 1, 4, 256>}, {pipeline_mode = #tpu.pipeline_mode<synchronous>, transform_indices = @transform_1, window_bounds = array<i64: 4, 18>}, {pipeline_mode = #tpu.pipeline_mode<synchronous>, transform_indices = @transform_2, window_bounds = array<i64: 4, 1>}, {pipeline_mode = #tpu.pipeline_mode<synchronous>, transform_indices = @transform_3, window_bounds = array<i64: 9, 256>}, {transform_indices = @transform_4, window_bounds = array<i64: 1, 4, 256>}]} {
    %c0 = arith.constant 0 : index
    %c0_0 = arith.constant 0 : index
    %c0_1 = arith.constant 0 : index
    %0 = vector.load %arg1[%c0, %c0_0, %c0_1] : memref<1x4x256xf32, #tpu.memory_space<vmem>>, vector<1x4x256xf32>
    %1 = vector.shape_cast %0 : vector<1x4x256xf32> to vector<4x256xf32>
    %cst = arith.constant dense<0.000000e+00> : vector<256xf32>
    %2 = vector.multi_reduction <add>, %1, %cst [0] : vector<4x256xf32> to vector<256xf32>
    %3 = vector.shape_cast %2 : vector<256xf32> to vector<1x256xf32>
    %cst_2 = arith.constant 4.000000e+00 : f32
    %4 = vector.broadcast %cst_2 : f32 to vector<1x256xf32>
    %5 = arith.divf %3, %4 : vector<1x256xf32>
    %cst_3 = arith.constant dense<0xFF800000> : vector<256xf32>
    %6 = vector.multi_reduction <maximumf>, %1, %cst_3 [0] : vector<4x256xf32> to vector<256xf32>
    %7 = vector.shape_cast %6 : vector<256xf32> to vector<1x256xf32>
    %c0_4 = arith.constant 0 : index
    %c0_5 = arith.constant 0 : index
    %8 = vector.load %arg2[%c0_4, %c0_5] : memref<4x18xf32, #tpu.memory_space<vmem>>, vector<4x18xf32>
    %cst_6 = arith.constant 0.000000e+00 : f32
    %9 = vector.broadcast %cst_6 : f32 to vector<4x256xf32>
    %cst_7 = arith.constant 0.000000e+00 : f32
    %10 = vector.broadcast %cst_7 : f32 to vector<1x17xf32>
    %11 = vector.extract_strided_slice %5 {offsets = [0, 0], sizes = [1, 239], strides = [1, 1]} : vector<1x256xf32> to vector<1x239xf32>
    %12 = tpu.concatenate %10, %11 in 1 : vector<1x17xf32>, vector<1x239xf32> -> vector<1x256xf32>
    %cst_8 = arith.constant 0.000000e+00 : f32
    %13 = vector.broadcast %cst_8 : f32 to vector<1x17xf32>
    %14 = vector.extract_strided_slice %7 {offsets = [0, 0], sizes = [1, 239], strides = [1, 1]} : vector<1x256xf32> to vector<1x239xf32>
    %15 = tpu.concatenate %13, %14 in 1 : vector<1x17xf32>, vector<1x239xf32> -> vector<1x256xf32>
    %16 = vector.extract_strided_slice %8 {offsets = [0, 0], sizes = [4, 1], strides = [1, 1]} : vector<4x18xf32> to vector<4x1xf32>
    %17 = vector.extract_strided_slice %8 {offsets = [0, 9], sizes = [4, 1], strides = [1, 1]} : vector<4x18xf32> to vector<4x1xf32>
    %18 = vector.broadcast %16 : vector<4x1xf32> to vector<4x256xf32>
    %19 = vector.broadcast %12 : vector<1x256xf32> to vector<4x256xf32>
    %20 = arith.mulf %18, %19 : vector<4x256xf32>
    %21 = vector.broadcast %17 : vector<4x1xf32> to vector<4x256xf32>
    %22 = vector.broadcast %15 : vector<1x256xf32> to vector<4x256xf32>
    %23 = arith.mulf %21, %22 : vector<4x256xf32>
    %24 = arith.addf %20, %23 : vector<4x256xf32>
    %c0_9 = arith.constant 0 : index
    %c0_10 = arith.constant 0 : index
    %25 = vector.load %arg4[%c0_9, %c0_10] : memref<9x256xf32, #tpu.memory_space<vmem>>, vector<1x256xf32>
    %26 = vector.broadcast %25 : vector<1x256xf32> to vector<4x256xf32>
    %27 = arith.mulf %24, %26 : vector<4x256xf32>
    %28 = arith.addf %9, %27 : vector<4x256xf32>
    %cst_11 = arith.constant 0.000000e+00 : f32
    %29 = vector.broadcast %cst_11 : f32 to vector<1x16xf32>
    %30 = vector.extract_strided_slice %5 {offsets = [0, 0], sizes = [1, 240], strides = [1, 1]} : vector<1x256xf32> to vector<1x240xf32>
    %31 = tpu.concatenate %29, %30 in 1 : vector<1x16xf32>, vector<1x240xf32> -> vector<1x256xf32>
    %cst_12 = arith.constant 0.000000e+00 : f32
    %32 = vector.broadcast %cst_12 : f32 to vector<1x16xf32>
    %33 = vector.extract_strided_slice %7 {offsets = [0, 0], sizes = [1, 240], strides = [1, 1]} : vector<1x256xf32> to vector<1x240xf32>
    %34 = tpu.concatenate %32, %33 in 1 : vector<1x16xf32>, vector<1x240xf32> -> vector<1x256xf32>
    %35 = vector.extract_strided_slice %8 {offsets = [0, 1], sizes = [4, 1], strides = [1, 1]} : vector<4x18xf32> to vector<4x1xf32>
    %36 = vector.extract_strided_slice %8 {offsets = [0, 10], sizes = [4, 1], strides = [1, 1]} : vector<4x18xf32> to vector<4x1xf32>
    %37 = vector.broadcast %35 : vector<4x1xf32> to vector<4x256xf32>
    %38 = vector.broadcast %31 : vector<1x256xf32> to vector<4x256xf32>
    %39 = arith.mulf %37, %38 : vector<4x256xf32>
    %40 = vector.broadcast %36 : vector<4x1xf32> to vector<4x256xf32>
    %41 = vector.broadcast %34 : vector<1x256xf32> to vector<4x256xf32>
    %42 = arith.mulf %40, %41 : vector<4x256xf32>
    %43 = arith.addf %39, %42 : vector<4x256xf32>
    %c1 = arith.constant 1 : index
    %c0_13 = arith.constant 0 : index
    %44 = vector.load %arg4[%c1, %c0_13] : memref<9x256xf32, #tpu.memory_space<vmem>>, vector<1x256xf32>
    %45 = vector.broadcast %44 : vector<1x256xf32> to vector<4x256xf32>
    %46 = arith.mulf %43, %45 : vector<4x256xf32>
    %47 = arith.addf %28, %46 : vector<4x256xf32>
    %cst_14 = arith.constant 0.000000e+00 : f32
    %48 = vector.broadcast %cst_14 : f32 to vector<1x15xf32>
    %49 = vector.extract_strided_slice %5 {offsets = [0, 0], sizes = [1, 241], strides = [1, 1]} : vector<1x256xf32> to vector<1x241xf32>
    %50 = tpu.concatenate %48, %49 in 1 : vector<1x15xf32>, vector<1x241xf32> -> vector<1x256xf32>
    %cst_15 = arith.constant 0.000000e+00 : f32
    %51 = vector.broadcast %cst_15 : f32 to vector<1x15xf32>
    %52 = vector.extract_strided_slice %7 {offsets = [0, 0], sizes = [1, 241], strides = [1, 1]} : vector<1x256xf32> to vector<1x241xf32>
    %53 = tpu.concatenate %51, %52 in 1 : vector<1x15xf32>, vector<1x241xf32> -> vector<1x256xf32>
    %54 = vector.extract_strided_slice %8 {offsets = [0, 2], sizes = [4, 1], strides = [1, 1]} : vector<4x18xf32> to vector<4x1xf32>
    %55 = vector.extract_strided_slice %8 {offsets = [0, 11], sizes = [4, 1], strides = [1, 1]} : vector<4x18xf32> to vector<4x1xf32>
    %56 = vector.broadcast %54 : vector<4x1xf32> to vector<4x256xf32>
    %57 = vector.broadcast %50 : vector<1x256xf32> to vector<4x256xf32>
    %58 = arith.mulf %56, %57 : vector<4x256xf32>
    %59 = vector.broadcast %55 : vector<4x1xf32> to vector<4x256xf32>
    %60 = vector.broadcast %53 : vector<1x256xf32> to vector<4x256xf32>
    %61 = arith.mulf %59, %60 : vector<4x256xf32>
    %62 = arith.addf %58, %61 : vector<4x256xf32>
    %c2 = arith.constant 2 : index
    %c0_16 = arith.constant 0 : index
    %63 = vector.load %arg4[%c2, %c0_16] : memref<9x256xf32, #tpu.memory_space<vmem>>, vector<1x256xf32>
    %64 = vector.broadcast %63 : vector<1x256xf32> to vector<4x256xf32>
    %65 = arith.mulf %62, %64 : vector<4x256xf32>
    %66 = arith.addf %47, %65 : vector<4x256xf32>
    %cst_17 = arith.constant 0.000000e+00 : f32
    %67 = vector.broadcast %cst_17 : f32 to vector<1x1xf32>
    %68 = vector.extract_strided_slice %5 {offsets = [0, 0], sizes = [1, 255], strides = [1, 1]} : vector<1x256xf32> to vector<1x255xf32>
    %69 = tpu.concatenate %67, %68 in 1 : vector<1x1xf32>, vector<1x255xf32> -> vector<1x256xf32>
    %cst_18 = arith.constant 0.000000e+00 : f32
    %70 = vector.broadcast %cst_18 : f32 to vector<1x1xf32>
    %71 = vector.extract_strided_slice %7 {offsets = [0, 0], sizes = [1, 255], strides = [1, 1]} : vector<1x256xf32> to vector<1x255xf32>
    %72 = tpu.concatenate %70, %71 in 1 : vector<1x1xf32>, vector<1x255xf32> -> vector<1x256xf32>
    %73 = vector.extract_strided_slice %8 {offsets = [0, 3], sizes = [4, 1], strides = [1, 1]} : vector<4x18xf32> to vector<4x1xf32>
    %74 = vector.extract_strided_slice %8 {offsets = [0, 12], sizes = [4, 1], strides = [1, 1]} : vector<4x18xf32> to vector<4x1xf32>
    %75 = vector.broadcast %73 : vector<4x1xf32> to vector<4x256xf32>
    %76 = vector.broadcast %69 : vector<1x256xf32> to vector<4x256xf32>
    %77 = arith.mulf %75, %76 : vector<4x256xf32>
    %78 = vector.broadcast %74 : vector<4x1xf32> to vector<4x256xf32>
    %79 = vector.broadcast %72 : vector<1x256xf32> to vector<4x256xf32>
    %80 = arith.mulf %78, %79 : vector<4x256xf32>
    %81 = arith.addf %77, %80 : vector<4x256xf32>
    %c3 = arith.constant 3 : index
    %c0_19 = arith.constant 0 : index
    %82 = vector.load %arg4[%c3, %c0_19] : memref<9x256xf32, #tpu.memory_space<vmem>>, vector<1x256xf32>
    %83 = vector.broadcast %82 : vector<1x256xf32> to vector<4x256xf32>
    %84 = arith.mulf %81, %83 : vector<4x256xf32>
    %85 = arith.addf %66, %84 : vector<4x256xf32>
    %86 = vector.extract_strided_slice %8 {offsets = [0, 4], sizes = [4, 1], strides = [1, 1]} : vector<4x18xf32> to vector<4x1xf32>
    %87 = vector.extract_strided_slice %8 {offsets = [0, 13], sizes = [4, 1], strides = [1, 1]} : vector<4x18xf32> to vector<4x1xf32>
    %88 = vector.broadcast %86 : vector<4x1xf32> to vector<4x256xf32>
    %89 = vector.broadcast %5 : vector<1x256xf32> to vector<4x256xf32>
    %90 = arith.mulf %88, %89 : vector<4x256xf32>
    %91 = vector.broadcast %87 : vector<4x1xf32> to vector<4x256xf32>
    %92 = vector.broadcast %7 : vector<1x256xf32> to vector<4x256xf32>
    %93 = arith.mulf %91, %92 : vector<4x256xf32>
    %94 = arith.addf %90, %93 : vector<4x256xf32>
    %c4 = arith.constant 4 : index
    %c0_20 = arith.constant 0 : index
    %95 = vector.load %arg4[%c4, %c0_20] : memref<9x256xf32, #tpu.memory_space<vmem>>, vector<1x256xf32>
    %96 = vector.broadcast %95 : vector<1x256xf32> to vector<4x256xf32>
    %97 = arith.mulf %94, %96 : vector<4x256xf32>
    %98 = arith.addf %85, %97 : vector<4x256xf32>
    %cst_21 = arith.constant 0.000000e+00 : f32
    %99 = vector.broadcast %cst_21 : f32 to vector<1x1xf32>
    %100 = vector.extract_strided_slice %5 {offsets = [0, 1], sizes = [1, 255], strides = [1, 1]} : vector<1x256xf32> to vector<1x255xf32>
    %101 = tpu.concatenate %100, %99 in 1 : vector<1x255xf32>, vector<1x1xf32> -> vector<1x256xf32>
    %cst_22 = arith.constant 0.000000e+00 : f32
    %102 = vector.broadcast %cst_22 : f32 to vector<1x1xf32>
    %103 = vector.extract_strided_slice %7 {offsets = [0, 1], sizes = [1, 255], strides = [1, 1]} : vector<1x256xf32> to vector<1x255xf32>
    %104 = tpu.concatenate %103, %102 in 1 : vector<1x255xf32>, vector<1x1xf32> -> vector<1x256xf32>
    %105 = vector.extract_strided_slice %8 {offsets = [0, 5], sizes = [4, 1], strides = [1, 1]} : vector<4x18xf32> to vector<4x1xf32>
    %106 = vector.extract_strided_slice %8 {offsets = [0, 14], sizes = [4, 1], strides = [1, 1]} : vector<4x18xf32> to vector<4x1xf32>
    %107 = vector.broadcast %105 : vector<4x1xf32> to vector<4x256xf32>
    %108 = vector.broadcast %101 : vector<1x256xf32> to vector<4x256xf32>
    %109 = arith.mulf %107, %108 : vector<4x256xf32>
    %110 = vector.broadcast %106 : vector<4x1xf32> to vector<4x256xf32>
    %111 = vector.broadcast %104 : vector<1x256xf32> to vector<4x256xf32>
    %112 = arith.mulf %110, %111 : vector<4x256xf32>
    %113 = arith.addf %109, %112 : vector<4x256xf32>
    %c5 = arith.constant 5 : index
    %c0_23 = arith.constant 0 : index
    %114 = vector.load %arg4[%c5, %c0_23] : memref<9x256xf32, #tpu.memory_space<vmem>>, vector<1x256xf32>
    %115 = vector.broadcast %114 : vector<1x256xf32> to vector<4x256xf32>
    %116 = arith.mulf %113, %115 : vector<4x256xf32>
    %117 = arith.addf %98, %116 : vector<4x256xf32>
    %cst_24 = arith.constant 0.000000e+00 : f32
    %118 = vector.broadcast %cst_24 : f32 to vector<1x15xf32>
    %119 = vector.extract_strided_slice %5 {offsets = [0, 15], sizes = [1, 241], strides = [1, 1]} : vector<1x256xf32> to vector<1x241xf32>
    %120 = tpu.concatenate %119, %118 in 1 : vector<1x241xf32>, vector<1x15xf32> -> vector<1x256xf32>
    %cst_25 = arith.constant 0.000000e+00 : f32
    %121 = vector.broadcast %cst_25 : f32 to vector<1x15xf32>
    %122 = vector.extract_strided_slice %7 {offsets = [0, 15], sizes = [1, 241], strides = [1, 1]} : vector<1x256xf32> to vector<1x241xf32>
    %123 = tpu.concatenate %122, %121 in 1 : vector<1x241xf32>, vector<1x15xf32> -> vector<1x256xf32>
    %124 = vector.extract_strided_slice %8 {offsets = [0, 6], sizes = [4, 1], strides = [1, 1]} : vector<4x18xf32> to vector<4x1xf32>
    %125 = vector.extract_strided_slice %8 {offsets = [0, 15], sizes = [4, 1], strides = [1, 1]} : vector<4x18xf32> to vector<4x1xf32>
    %126 = vector.broadcast %124 : vector<4x1xf32> to vector<4x256xf32>
    %127 = vector.broadcast %120 : vector<1x256xf32> to vector<4x256xf32>
    %128 = arith.mulf %126, %127 : vector<4x256xf32>
    %129 = vector.broadcast %125 : vector<4x1xf32> to vector<4x256xf32>
    %130 = vector.broadcast %123 : vector<1x256xf32> to vector<4x256xf32>
    %131 = arith.mulf %129, %130 : vector<4x256xf32>
    %132 = arith.addf %128, %131 : vector<4x256xf32>
    %c6 = arith.constant 6 : index
    %c0_26 = arith.constant 0 : index
    %133 = vector.load %arg4[%c6, %c0_26] : memref<9x256xf32, #tpu.memory_space<vmem>>, vector<1x256xf32>
    %134 = vector.broadcast %133 : vector<1x256xf32> to vector<4x256xf32>
    %135 = arith.mulf %132, %134 : vector<4x256xf32>
    %136 = arith.addf %117, %135 : vector<4x256xf32>
    %cst_27 = arith.constant 0.000000e+00 : f32
    %137 = vector.broadcast %cst_27 : f32 to vector<1x16xf32>
    %138 = vector.extract_strided_slice %5 {offsets = [0, 16], sizes = [1, 240], strides = [1, 1]} : vector<1x256xf32> to vector<1x240xf32>
    %139 = tpu.concatenate %138, %137 in 1 : vector<1x240xf32>, vector<1x16xf32> -> vector<1x256xf32>
    %cst_28 = arith.constant 0.000000e+00 : f32
    %140 = vector.broadcast %cst_28 : f32 to vector<1x16xf32>
    %141 = vector.extract_strided_slice %7 {offsets = [0, 16], sizes = [1, 240], strides = [1, 1]} : vector<1x256xf32> to vector<1x240xf32>
    %142 = tpu.concatenate %141, %140 in 1 : vector<1x240xf32>, vector<1x16xf32> -> vector<1x256xf32>
    %143 = vector.extract_strided_slice %8 {offsets = [0, 7], sizes = [4, 1], strides = [1, 1]} : vector<4x18xf32> to vector<4x1xf32>
    %144 = vector.extract_strided_slice %8 {offsets = [0, 16], sizes = [4, 1], strides = [1, 1]} : vector<4x18xf32> to vector<4x1xf32>
    %145 = vector.broadcast %143 : vector<4x1xf32> to vector<4x256xf32>
    %146 = vector.broadcast %139 : vector<1x256xf32> to vector<4x256xf32>
    %147 = arith.mulf %145, %146 : vector<4x256xf32>
    %148 = vector.broadcast %144 : vector<4x1xf32> to vector<4x256xf32>
    %149 = vector.broadcast %142 : vector<1x256xf32> to vector<4x256xf32>
    %150 = arith.mulf %148, %149 : vector<4x256xf32>
    %151 = arith.addf %147, %150 : vector<4x256xf32>
    %c7 = arith.constant 7 : index
    %c0_29 = arith.constant 0 : index
    %152 = vector.load %arg4[%c7, %c0_29] : memref<9x256xf32, #tpu.memory_space<vmem>>, vector<1x256xf32>
    %153 = vector.broadcast %152 : vector<1x256xf32> to vector<4x256xf32>
    %154 = arith.mulf %151, %153 : vector<4x256xf32>
    %155 = arith.addf %136, %154 : vector<4x256xf32>
    %cst_30 = arith.constant 0.000000e+00 : f32
    %156 = vector.broadcast %cst_30 : f32 to vector<1x17xf32>
    %157 = vector.extract_strided_slice %5 {offsets = [0, 17], sizes = [1, 239], strides = [1, 1]} : vector<1x256xf32> to vector<1x239xf32>
    %158 = tpu.concatenate %157, %156 in 1 : vector<1x239xf32>, vector<1x17xf32> -> vector<1x256xf32>
    %cst_31 = arith.constant 0.000000e+00 : f32
    %159 = vector.broadcast %cst_31 : f32 to vector<1x17xf32>
    %160 = vector.extract_strided_slice %7 {offsets = [0, 17], sizes = [1, 239], strides = [1, 1]} : vector<1x256xf32> to vector<1x239xf32>
    %161 = tpu.concatenate %160, %159 in 1 : vector<1x239xf32>, vector<1x17xf32> -> vector<1x256xf32>
    %162 = vector.extract_strided_slice %8 {offsets = [0, 8], sizes = [4, 1], strides = [1, 1]} : vector<4x18xf32> to vector<4x1xf32>
    %163 = vector.extract_strided_slice %8 {offsets = [0, 17], sizes = [4, 1], strides = [1, 1]} : vector<4x18xf32> to vector<4x1xf32>
    %164 = vector.broadcast %162 : vector<4x1xf32> to vector<4x256xf32>
    %165 = vector.broadcast %158 : vector<1x256xf32> to vector<4x256xf32>
    %166 = arith.mulf %164, %165 : vector<4x256xf32>
    %167 = vector.broadcast %163 : vector<4x1xf32> to vector<4x256xf32>
    %168 = vector.broadcast %161 : vector<1x256xf32> to vector<4x256xf32>
    %169 = arith.mulf %167, %168 : vector<4x256xf32>
    %170 = arith.addf %166, %169 : vector<4x256xf32>
    %c8 = arith.constant 8 : index
    %c0_32 = arith.constant 0 : index
    %171 = vector.load %arg4[%c8, %c0_32] : memref<9x256xf32, #tpu.memory_space<vmem>>, vector<1x256xf32>
    %172 = vector.broadcast %171 : vector<1x256xf32> to vector<4x256xf32>
    %173 = arith.mulf %170, %172 : vector<4x256xf32>
    %174 = arith.addf %155, %173 : vector<4x256xf32>
    %c0_33 = arith.constant 0 : index
    %c0_34 = arith.constant 0 : index
    %175 = vector.load %arg3[%c0_33, %c0_34] : memref<4x1xf32, #tpu.memory_space<vmem>>, vector<4x1xf32>
    %176 = vector.broadcast %175 : vector<4x1xf32> to vector<4x256xf32>
    %177 = arith.addf %174, %176 : vector<4x256xf32>
    %cst_35 = arith.constant 0.000000e+00 : f32
    %178 = vector.broadcast %cst_35 : f32 to vector<4x256xf32>
    %179 = arith.subf %178, %177 : vector<4x256xf32>
    %180 = math.exp %179 : vector<4x256xf32>
    %cst_36 = arith.constant 1.000000e+00 : f32
    %181 = vector.broadcast %cst_36 : f32 to vector<4x256xf32>
    %182 = arith.addf %181, %180 : vector<4x256xf32>
    %183 = tpu.reciprocal %182 : vector<4x256xf32> -> vector<4x256xf32>
    %184 = arith.mulf %183, %1 : vector<4x256xf32>
    %185 = arith.addf %184, %1 : vector<4x256xf32>
    %c0_37 = arith.constant 0 : index
    %c0_38 = arith.constant 0 : index
    %c0_39 = arith.constant 0 : index
    %186 = vector.load %arg5[%c0_37, %c0_38, %c0_39] : memref<1x4x256xf32, #tpu.memory_space<vmem>>, vector<1x4x256xf32>
    %187 = vector.shape_cast %186 : vector<1x4x256xf32> to vector<4x256xf32>
    %188 = vector.shape_cast %185 : vector<4x256xf32> to vector<1x4x256xf32>
    tpu.vector_store %arg5[%c0_37, %c0_38, %c0_39], %188 {strides = array<i32>} : memref<1x4x256xf32, #tpu.memory_space<vmem>>, vector<1x4x256xf32>,
    return
  }
  func.func @transform_0(%arg0: i32) -> (i32, i32, i32) {
    %c0_i32 = arith.constant 0 : i32
    %c0_i32_0 = arith.constant 0 : i32
    %c0_i32_1 = arith.constant 0 : i32
    return %arg0, %c0_i32, %c0_i32_0 : i32, i32, i32
  }
  func.func @transform_1(%arg0: i32) -> (i32, i32) {
    %c0_i32 = arith.constant 0 : i32
    %c0_i32_0 = arith.constant 0 : i32
    %c0_i32_1 = arith.constant 0 : i32
    return %c0_i32, %c0_i32_0 : i32, i32
  }
  func.func @transform_2(%arg0: i32) -> (i32, i32) {
    %c0_i32 = arith.constant 0 : i32
    %c0_i32_0 = arith.constant 0 : i32
    %c0_i32_1 = arith.constant 0 : i32
    return %c0_i32, %c0_i32_0 : i32, i32
  }
  func.func @transform_3(%arg0: i32) -> (i32, i32) {
    %c0_i32 = arith.constant 0 : i32
    %c0_i32_0 = arith.constant 0 : i32
    %c0_i32_1 = arith.constant 0 : i32
    return %c0_i32, %c0_i32_0 : i32, i32
  }
  func.func @transform_4(%arg0: i32) -> (i32, i32, i32) {
    %c0_i32 = arith.constant 0 : i32
    %c0_i32_0 = arith.constant 0 : i32
    %c0_i32_1 = arith.constant 0 : i32
    return %arg0, %c0_i32, %c0_i32_0 : i32, i32, i32
  }
}

</mosaic_0001>

<bundles_post_ra>
// kernel: sab_forward.1
= control target key start
LH: loop header
LB: loop body
LE: loop exit
PB: predicated region body
PF: predicated region fallthrough
CT: control target
= control target key end

     0   :  { %s1006_s15 = smov 0   ;;  %s1278_s0 = inlined_call_operand.vmem [shape: f32[2,4,256], index: 0, kind: input, shape index: {}]   ;;  %s1279_s1 = inlined_call_operand.vmem [shape: f32[4,18], index: 1, kind: input, shape index: {}]   ;;  %s1280_s2 = inlined_call_operand.vmem [shape: f32[4,1], index: 2, kind: input, shape index: {}]   ;;  %s1281_s3 = inlined_call_operand.vmem [shape: f32[9,256], index: 3, kind: input, shape index: {}]   ;;  %s1282_s4 = inlined_call_operand.vmem [shape: f32[2,4,256], index: 4, kind: output, shape index: {}]  }
   0x1 LB: > { %s864_s16 = sadd.s32 4294967295, %s953_s15   ;;  %p868_p0 = scmp.ge.s32.totalorder %s953_s15, 1  ;;  %s953_s15 = sphi %s1006_s15, %s14_s15  }
   0x2   : > { %p162_p1 = scmp.lt.s32.totalorder %s953_s15, 3 }
   0x4   : > { %p163_p2 = pnand %p868_p0, %p162_p1 }
   0x5   : > { %v1017_v0 = vld [vmem:[%s1279_s1] sm:$0xf] (!%p163_p2)  ;;  %v955_v1 = vmov (!%p163_p2), 9   ;;  %v956_v2 = vmov (!%p163_p2), 0   ;;  %p188_p3 = scmp.lt.s32.totalorder (!%p163_p2), %s864_s16, 1  ;;  %vm202_vm0 = vcmask (!%p163_p2), 1043456   ;;  %v261_v54 = vlaneseq (!%p163_p2) }
   0x6   : > { %166 = sbr.rel (%p163_p2) target bundleno = 309 (0x135), region = 36  ;;  %920 = vset.pattern.permute.xlu1 (!%p163_p2), %v955_v1  ;;  %919 = vset.pattern.permute.xlu0 (!%p163_p2), %v956_v2  ;;  %v957_v3 = vmov (!%p163_p2), 10   ;;  %v958_v4 = vmov (!%p163_p2), 1   ;;  %v959_v13 = vmov (!%p163_p2), 2   ;;  %v960_v18 = vmov (!%p163_p2), 11   ;;  %s962_s23 = smov (!%p163_p2), 17  }
   0x7   : > { %272 = vperm.xlu1 (!%p163_p2), %920, %v1017_v0   ;;  %258 = vperm.xlu0 (!%p163_p2), %919, %v1017_v0   ;;  %v961_v27 = vmov (!%p163_p2), 3   ;;  %s963_s24 = smov (!%p163_p2), 16   ;;  %v964_v40 = vmov (!%p163_p2), 12   ;;  %s965_s25 = smov (!%p163_p2), 15   ;;  %v966_v41 = vmov (!%p163_p2), 4   ;;  %v967_v42 = vmov (!%p163_p2), 13  }
   0x8   : > { %s968_s26 = smov (!%p163_p2), 1   ;;  %v969_v43 = vmov (!%p163_p2), 14   ;;  %v970_v44 = vmov (!%p163_p2), 5   ;;  %s971_s27 = smov (!%p163_p2), 127   ;;  %v972_v45 = vmov (!%p163_p2), 7   ;;  %v973_v46 = vmov (!%p163_p2), 6  }
   0x9   : > { %s974_s28 = smov (!%p163_p2), 113   ;;  %v975_v47 = vmov (!%p163_p2), 17   ;;  %v976_v48 = vmov (!%p163_p2), 15   ;;  %v977_v49 = vmov (!%p163_p2), 16   ;;  %s978_s29 = smov (!%p163_p2), 112   ;;  %v980_v50 = vmov (!%p163_p2), 8  }
   0xa   : > { %s979_s30 = smov (!%p163_p2), 111   ;;  %v782_v51 = vld [vmem:[%s1280_s2] sm:$0xf] (!%p163_p2)  ;;  %v262_v55 = vshrl.u32 (!%p163_p2), %v261_v54, 7  ;;  %vm241_vm1 = vcmask (!%p163_p2), 138240   ;;  %vm307_vm2 = vcmask (!%p163_p2), 130048  }
   0xb   : > { %922 = vset.pattern.permute.xlu1 (!%p163_p2), %v957_v3  ;;  %921 = vset.pattern.permute.xlu0 (!%p163_p2), %v958_v4  ;;  %vm371_vm3 = vcmask (!%p163_p2), 121856   ;;  %vm435_vm4 = vcmask (!%p163_p2), 7168   ;;  %vm530_vm5 = vcmask (!%p163_p2), 1039360   ;;  %vm594_vm6 = vcmask (!%p163_p2), 924672  }
   0xc   : > { %335 = vperm.xlu1 (!%p163_p2), %922, %v1017_v0   ;;  %321 = vperm.xlu0 (!%p163_p2), %921, %v1017_v0   ;;  %v1100_v58 = vsub.s32 (!%p163_p2), 0, %v262_v55  ;;  %vm658_vm7 = vcmask (!%p163_p2), 916480   ;;  %vm722_vm8 = vcmask (!%p163_p2), 908288  }
   0xd   : > { %s1284_s16 = smov (!%p188_p3, %s864_s16), 1 }
   0xe   : > { %s883_s19 = sshll.u32 %s1284_s16, 3 }
   0xf   : > { %s192_s22 = scalar_lea.vmem %s1278_s0, %s883_s19 }
  0x10   : > { %v1032_v5 = vld [vmem:[%s192_s22] sm:$0xff]  ;;  %923 = vset.pattern.permute.xlu1 %v959_v13  ;;  %924 = vset.pattern.permute.xlu0 %v960_v18 }
  0x11   : > { %v220_v6 = vsel %vm202_vm0, %v1032_v5, -inf  ;;  %v203_v7 = vsel %vm202_vm0, %v1032_v5, 0.0  ;;  %v1038_v8 = vcombine.high %v1032_v5, %v1032_v5  ;;  %385 = vperm.xlu1 %923, %v1017_v0  }
  0x12   : > { %v221_v9 = vrot.slane %v220_v6, 4  ;;  %v204_v10 = vrot.slane %v203_v7, 4 }
  0x13   : > { %v227_v11 = vsel %vm202_vm0, %v1038_v8, -inf  ;;  %v210_v12 = vsel %vm202_vm0, %v1038_v8, 0.0 }
  0x14   : > { %v222_v14 = vmax.f32 %v220_v6, %v221_v9  ;;  %v205_v15 = vadd.f32 %v204_v10, %v203_v7  ;;  %v228_v16 = vrot.slane %v227_v11, 4  ;;  %v211_v17 = vrot.slane %v210_v12, 4 }
  0x15   : > { %925 = vset.pattern.permute.xlu1 %v961_v27  ;;  %v873_v27 = vld [vmem:[%s1281_s3 + $0x1] ss:$8 sm:$0x3] }
  0x16   : > { %v223_v19 = vrot.slane %v222_v14, 2  ;;  %v206_v20 = vrot.slane %v205_v15, 2  ;;  %v229_v21 = vmax.f32 %v227_v11, %v228_v16  ;;  %v212_v22 = vadd.f32 %v211_v17, %v210_v12 }
  0x18   : > { %v224_v23 = vmax.f32 %v222_v14, %v223_v19  ;;  %v207_v24 = vadd.f32 %v206_v20, %v205_v15  ;;  %v230_v25 = vrot.slane %v229_v21, 2  ;;  %v213_v26 = vrot.slane %v212_v22, 2 }
  0x1a   : > { %v225_v28 = vrot.slane %v224_v23, 1  ;;  %v208_v29 = vrot.slane %v207_v24, 1  ;;  %v231_v30 = vmax.f32 %v229_v21, %v230_v25  ;;  %v214_v31 = vadd.f32 %v213_v26, %v212_v22 }
  0x1c   : > { %v1043_v32 = vmax.f32 %v224_v23, %v225_v28  ;;  %v209_v33 = vadd.f32 %v208_v29, %v207_v24  ;;  %v232_v34 = vrot.slane %v231_v30, 1  ;;  %v215_v35 = vrot.slane %v214_v31, 1  ;;  %v287_v24 = vld [vmem:[%s1281_s3] ss:$8 sm:$0x3] }
  0x1e   : > { %248 = vrot.lane.b32.xlu1 %v1043_v32, %s962_s23  ;;  %v1046_v36 = vmul.f32 0.25, %v209_v33  ;;  %v1048_v37 = vmax.f32 %v231_v30, %v232_v34  ;;  %v216_v38 = vadd.f32 %v215_v35, %v214_v31  ;;  %v1120_v30 = vsub.s32 1, %v262_v55 }
  0x1f   : > { %v292_v33 = vrot.slane %v287_v24, %v1100_v58  ;;  %v356_v34 = vrot.slane %v873_v27, %v1100_v58 }
  0x20   : > { %237 = vrot.lane.b32.xlu0 %v1046_v36, %s962_s23  ;;  %v1051_v39 = vmul.f32 0.25, %v216_v38 }
  0x22   : > { %250 = vrot.lane.b32.xlu1 %v1048_v37, %s962_s23 }
  0x24   : > { %239 = vrot.lane.b32.xlu0 %v1051_v39, %s962_s23 }
  0x26   : > { %303 = vrot.lane.b32.xlu1 %v1046_v36, %s963_s24 }
  0x28   : > { %399 = vperm.xlu0 %924, %v1017_v0  }
  0x2a   : > { %305 = vrot.lane.b32.xlu1 %v1051_v39, %s963_s24 }
  0x2c   : > { %314 = vrot.lane.b32.xlu0 %v1048_v37, %s963_s24 }
  0x2d   : > { %926 = vset.pattern.permute.xlu0 %v964_v40 }
  0x2e   : > { %312 = vrot.lane.b32.xlu1 %v1043_v32, %s963_s24 }
  0x30   : > { %463 = vperm.xlu0 %926, %v1017_v0  }
  0x32   : > { %449 = vperm.xlu1 %925, %v1017_v0  }
  0x34   : > { %376 = vrot.lane.b32.xlu0 %v1043_v32, %s965_s25 }
  0x35   : > { %927 = vset.pattern.permute.xlu0 %v966_v41 }
  0x36   : > { %367 = vrot.lane.b32.xlu1 %v1046_v36, %s965_s25 }
  0x37   : > { %928 = vset.pattern.permute.xlu1 %v967_v42  ;;  %v296_v42 = vrot.slane %v287_v24, %v1120_v30 }
  0x38   : > { %496 = vperm.xlu0 %927, %v1017_v0  }
  0x3a   : > { %369 = vrot.lane.b32.xlu1 %v1051_v39, %s965_s25 }
  0x3c   : > { %433 = vrot.lane.b32.xlu0 %v1051_v39, %s968_s26 }
  0x3d   : > { %930 = vset.pattern.permute.xlu0 %v969_v43  ;;  %v360_v43 = vrot.slane %v873_v27, %v1120_v30 }
  0x3e   : > { %378 = vrot.lane.b32.xlu1 %v1048_v37, %s965_s25 }
  0x40   : > { %442 = vrot.lane.b32.xlu0 %v1048_v37, %s968_s26 }
  0x42   : > { %502 = vperm.xlu1 %928, %v1017_v0  }
  0x44   : > { %558 = vperm.xlu0 %930, %v1017_v0  }
  0x46   : > { %431 = vrot.lane.b32.xlu1 %v1046_v36, %s968_s26 }
  0x47   : > { %929 = vset.pattern.permute.xlu1 %v970_v44 }
  0x48   : > { %526 = vrot.lane.b32.xlu0 %v1046_v36, %s971_s27 }
  0x49   : > { %933 = vset.pattern.permute.xlu0 %v972_v45 }
  0x4a   : > { %440 = vrot.lane.b32.xlu1 %v1043_v32, %s968_s26 }
  0x4c   : > { %535 = vrot.lane.b32.xlu0 %v1043_v32, %s971_s27 }
  0x4e   : > { %544 = vperm.xlu1 %929, %v1017_v0  }
  0x50   : > { %672 = vperm.xlu0 %933, %v1017_v0  }
  0x52   : > { %931 = vset.pattern.permute.xlu1 %v973_v46 }
  0x53   : > { %608 = vperm.xlu1 %931, %v1017_v0  }
  0x54   : > { %592 = vrot.lane.b32.xlu0 %v1051_v39, %s974_s28 }
  0x55   : > { %936 = vset.pattern.permute.xlu0 %v975_v47 }
  0x57   : > { %932 = vset.pattern.permute.xlu1 %v976_v48 }
  0x58   : > { %622 = vperm.xlu1 %932, %v1017_v0   ;;  %601 = vrot.lane.b32.xlu0 %v1048_v37, %s974_s28 }
  0x5c   : > { %528 = vrot.lane.b32.xlu1 %v1051_v39, %s971_s27  ;;  %750 = vperm.xlu0 %936, %v1017_v0  }
  0x5d   : > { %934 = vset.pattern.permute.xlu1 %v977_v49 }
  0x60   : > { %537 = vrot.lane.b32.xlu1 %v1048_v37, %s971_s27  ;;  %663 = vrot.lane.b32.xlu0 %v1043_v32, %s978_s29 }
  0x61   : > { %937 = vset.pattern.permute.xlu0 %v956_v2 }
  0x64   : > { %686 = vperm.xlu1 %934, %v1017_v0   ;;  %718 = vrot.lane.b32.xlu0 %v1046_v36, %s979_s30 }
  0x68   : > { %590 = vrot.lane.b32.xlu1 %v1046_v36, %s974_s28  ;;  %727 = vrot.lane.b32.xlu0 %v1043_v32, %s979_s30 }
  0x69   : > { %935 = vset.pattern.permute.xlu1 %v980_v50 }
  0x6c   : > { %599 = vrot.lane.b32.xlu1 %v1043_v32, %s974_s28  ;;  %785 = vperm.xlu0 %937, %v782_v51  }
  0x70   : > { %736 = vperm.xlu1 %935, %v1017_v0  }
  0x74   : > { %654 = vrot.lane.b32.xlu1 %v1046_v36, %s978_s29 }
  0x78   : > { %656 = vrot.lane.b32.xlu1 %v1051_v39, %s978_s29 }
  0x7c   : > { %665 = vrot.lane.b32.xlu1 %v1048_v37, %s978_s29 }
  0x80   : > { %720 = vrot.lane.b32.xlu1 %v1051_v39, %s979_s30 }
  0x84   : > { %729 = vrot.lane.b32.xlu1 %v1048_v37, %s979_s30  ;;  %s197_s30 = scalar_lea.vmem %s1282_s4, %s883_s19 }
  0x86   : > { %v273_v52 = vpop.permute.xlu1 %272  ;;  %v259_v53 = vpop.permute.xlu0 %258 }
  0x8b   : > { %v336_v56 = vpop.permute.xlu1 %335  ;;  %v322_v57 = vpop.permute.xlu0 %321 }
  0x90   : > { %v1102_v60 = vpop.permute.xlu1 %385 }
  0x92   : > { %v238_v59 = vpop.permute.xlu0 %237 }
  0x93   : > { %v245_v61 = vsel %vm241_vm1, 0.0, %v238_v59 }
  0x94   : > { %v264_v62 = vrot.slane %v245_v61, %v1100_v58  ;;  %v249_v0 = vpop.permute.xlu1 %248 }
  0x95   : > { %v255_v2 = vsel %vm241_vm1, 0.0, %v249_v0 }
  0x96   : > { %v240_v63 = vpop.permute.xlu0 %239  ;;  %v278_v3 = vrot.slane %v255_v2, %v1100_v58  ;;  %v269_v4 = vmul.f32 %v264_v62, %v259_v53 }
  0x97   : > { %v242_v1 = vsel %vm241_vm1, %v238_v59, %v240_v63 }
  0x98   : > { %v268_v6 = vrot.slane %v242_v1, %v1100_v58  ;;  %v283_v7 = vmul.f32 %v278_v3, %v273_v52  ;;  %v251_v9 = vpop.permute.xlu1 %250 }
  0x99   : > { %v252_v10 = vsel %vm241_vm1, %v249_v0, %v251_v9 }
  0x9a   : > { %v285_v11 = vadd.f32 %v283_v7, %v269_v4  ;;  %v282_v12 = vrot.slane %v252_v10, %v1100_v58  ;;  %v270_v13 = vmul.f32 %v268_v6, %v259_v53 }
  0x9c   : > { %v284_v14 = vmul.f32 %v282_v12, %v273_v52  ;;  %v304_v15 = vpop.permute.xlu1 %303  ;;  %v299_v46 = vmul.f32 %v292_v33, %v285_v11 }
  0x9d   : > { %v311_v16 = vsel %vm307_vm2, 0.0, %v304_v15 }
  0x9e   : > { %v286_v17 = vadd.f32 %v284_v14, %v270_v13  ;;  %v327_v18 = vrot.slane %v311_v16, %v1100_v58 }
  0xa0   : > { %v332_v19 = vmul.f32 %v327_v18, %v322_v57  ;;  %v306_v20 = vpop.permute.xlu1 %305  ;;  %v300_v51 = vmul.f32 %v296_v42, %v286_v17 }
  0xa1   : > { %v308_v21 = vsel %vm307_vm2, %v304_v15, %v306_v20 }
  0xa2   : > { %v331_v22 = vrot.slane %v308_v21, %v1100_v58 }
  0xa4   : > { %v333_v25 = vmul.f32 %v331_v22, %v322_v57  ;;  %v313_v26 = vpop.permute.xlu1 %312 }
  0xa5   : > { %v319_v28 = vsel %vm307_vm2, 0.0, %v313_v26 }
  0xa6   : > { %v341_v29 = vrot.slane %v319_v28, %v1100_v58  ;;  %v875_v28 = vld [vmem:[%s1281_s3 + $0x3] ss:$8 sm:$0x3] }
  0xa7   : > { %v400_v23 = vpop.permute.xlu0 %399 }
  0xa8   : > { %v346_v35 = vmul.f32 %v341_v29, %v336_v56 }
  0xaa   : > { %v348_v41 = vadd.f32 %v346_v35, %v332_v19  ;;  %v484_v35 = vrot.slane %v875_v28, %v1100_v58 }
  0xab   : > { %v315_v31 = vpop.permute.xlu0 %314 }
  0xac   : > { %v316_v38 = vsel %vm307_vm2, %v313_v26, %v315_v31  ;;  %v363_v47 = vmul.f32 %v356_v34, %v348_v41 }
  0xad   : > { %v345_v40 = vrot.slane %v316_v38, %v1100_v58  ;;  %v488_v38 = vrot.slane %v875_v28, %v1120_v30 }
  0xae   : > { %v365_v50 = vadd.f32 %v363_v47, %v299_v46 }
  0xaf   : > { %v347_v44 = vmul.f32 %v345_v40, %v336_v56  ;;  %v464_v45 = vpop.permute.xlu0 %463  ;;  %v874_v56 = vld [vmem:[%s1281_s3 + $0x2] ss:$8 sm:$0x3] }
  0xb0   : > { %v420_v0 = vrot.slane %v874_v56, %v1100_v58  ;;  %v424_v15 = vrot.slane %v874_v56, %v1120_v30 }
  0xb1   : > { %v349_v48 = vadd.f32 %v347_v44, %v333_v25  ;;  %v450_v49 = vpop.permute.xlu1 %449 }
  0xb3   : > { %v364_v52 = vmul.f32 %v360_v43, %v349_v48  ;;  %v377_v53 = vpop.permute.xlu0 %376 }
  0xb4   : > { %v383_v54 = vsel %vm371_vm3, 0.0, %v377_v53 }
  0xb5   : > { %v366_v55 = vadd.f32 %v364_v52, %v300_v51  ;;  %v405_v57 = vrot.slane %v383_v54, %v1100_v58  ;;  %v368_v59 = vpop.permute.xlu1 %367 }
  0xb6   : > { %v375_v61 = vsel %vm371_vm3, 0.0, %v368_v59 }
  0xb7   : > { %v410_v62 = vmul.f32 %v405_v57, %v400_v23  ;;  %v391_v63 = vrot.slane %v375_v61, %v1100_v58  ;;  %v1139_v9 = vpop.permute.xlu0 %496 }
  0xb9   : > { %v396_v1 = vmul.f32 %v391_v63, %v1102_v60  ;;  %v370_v2 = vpop.permute.xlu1 %369 }
  0xba   : > { %v372_v3 = vsel %vm371_vm3, %v368_v59, %v370_v2 }
  0xbb   : > { %v412_v4 = vadd.f32 %v410_v62, %v396_v1  ;;  %v395_v6 = vrot.slane %v372_v3, %v1100_v58  ;;  %v434_v18 = vpop.permute.xlu0 %433  ;;  %v1175_v3 = vld [vmem:[%s1281_s3 + $0x4] ss:$8 sm:$0x3] }
  0xbd   : > { %v427_v7 = vmul.f32 %v420_v0, %v412_v4  ;;  %v397_v10 = vmul.f32 %v395_v6, %v1102_v60  ;;  %v379_v11 = vpop.permute.xlu1 %378 }
  0xbe   : > { %v380_v12 = vsel %vm371_vm3, %v377_v53, %v379_v11  ;;  %v515_v11 = vrot.slane %v1175_v3, %v1100_v58 }
  0xbf   : > { %v429_v13 = vadd.f32 %v427_v7, %v365_v50  ;;  %v409_v14 = vrot.slane %v380_v12, %v1100_v58  ;;  %v443_v60 = vpop.permute.xlu0 %442  ;;  %v1182_v7 = vld [vmem:[%s1281_s3 + $0x6] ss:$8 sm:$0x3]  ;;  %v519_v12 = vrot.slane %v1175_v3, %v1120_v30 }
  0xc1   : > { %v411_v16 = vmul.f32 %v409_v14, %v400_v23  ;;  %v1145_v17 = vpop.permute.xlu1 %502 }
  0xc3   : > { %v413_v19 = vadd.f32 %v411_v16, %v397_v10  ;;  %v559_v46 = vpop.permute.xlu0 %558  ;;  %v1187_v10 = vld [vmem:[%s1281_s3 + $0x5] ss:$8 sm:$0x3] }
  0xc5   : > { %v428_v20 = vmul.f32 %v424_v15, %v413_v19  ;;  %v432_v21 = vpop.permute.xlu1 %431  ;;  %v647_v19 = vrot.slane %v1182_v7, %v1120_v30 }
  0xc6   : > { %v436_v22 = vsel %vm435_vm4, %v432_v21, %v434_v18  ;;  %v439_v24 = vsel %vm435_vm4, 0.0, %v432_v21  ;;  %v505_v21 = vmul.f32 %v1145_v17, %v1043_v32  ;;  %v506_v32 = vmul.f32 %v1145_v17, %v1048_v37 }
  0xc7   : > { %v430_v25 = vadd.f32 %v428_v20, %v366_v55  ;;  %v455_v26 = vrot.slane %v439_v24, %v1100_v58  ;;  %v459_v27 = vrot.slane %v436_v22, %v1100_v58  ;;  %v527_v55 = vpop.permute.xlu0 %526  ;;  %v499_v20 = vmul.f32 %v1139_v9, %v1046_v36 }
  0xc8   : > { %v579_v22 = vrot.slane %v1187_v10, %v1100_v58  ;;  %v500_v36 = vmul.f32 %v1139_v9, %v1051_v39  ;;  %v643_v39 = vrot.slane %v1182_v7, %v1100_v58 }
  0xc9   : > { %v441_v23 = vpop.permute.xlu1 %440  ;;  %v460_v40 = vmul.f32 %v455_v26, %v450_v49  ;;  %v461_v41 = vmul.f32 %v459_v27, %v450_v49  ;;  %v583_v26 = vrot.slane %v1187_v10, %v1120_v30 }
  0xca   : > { %v444_v29 = vsel %vm435_vm4, %v441_v23, %v443_v60  ;;  %v447_v31 = vsel %vm435_vm4, 0.0, %v441_v23 }
  0xcb   : > { %v469_v33 = vrot.slane %v447_v31, %v1100_v58  ;;  %v473_v34 = vrot.slane %v444_v29, %v1100_v58  ;;  %v536_v59 = vpop.permute.xlu0 %535 }
  0xcd   : > { %v474_v42 = vmul.f32 %v469_v33, %v464_v45  ;;  %v475_v43 = vmul.f32 %v473_v34, %v464_v45  ;;  %v1156_v44 = vpop.permute.xlu1 %544 }
  0xcf   : > { %v476_v47 = vadd.f32 %v474_v42, %v460_v40  ;;  %v477_v48 = vadd.f32 %v475_v43, %v461_v41  ;;  %v1166_v45 = vpop.permute.xlu0 %672  ;;  %v508_v42 = vadd.f32 %v506_v32, %v500_v36 }
  0xd1   : > { %v491_v50 = vmul.f32 %v484_v35, %v476_v47  ;;  %v492_v51 = vmul.f32 %v488_v38, %v477_v48  ;;  %v507_v38 = vadd.f32 %v505_v21, %v499_v20  ;;  %v523_v20 = vmul.f32 %v519_v12, %v508_v42 }
  0xd2   : > { %v1158_v52 = vpop.permute.xlu1 %608 }
  0xd3   : > { %v1160_v53 = vadd.f32 %v491_v50, %v429_v13  ;;  %v1162_v54 = vadd.f32 %v492_v51, %v430_v25  ;;  %v593_v62 = vpop.permute.xlu0 %592  ;;  %v879_v51 = vld [vmem:[%s1281_s3 + $0x7] ss:$8 sm:$0x3] }
  0xd4   : > { %v598_v31 = vsel %vm594_vm6, %v593_v62, 0.0  ;;  %v711_v10 = vrot.slane %v879_v51, %v1120_v30 }
  0xd5   : > { %v618_v43 = vrot.slane %v598_v31, %v1100_v58 }
  0xd7   : > { %v1164_v57 = vpop.permute.xlu1 %622  ;;  %v602_v1 = vpop.permute.xlu0 %601  ;;  %v620_v21 = vmul.f32 %v618_v43, %v1158_v52 }
  0xd8   : > { %v606_v25 = vsel %vm594_vm6, %v602_v1, 0.0 }
  0xd9   : > { %v632_v40 = vrot.slane %v606_v25, %v1100_v58  ;;  %v880_v25 = vld [vmem:[%s1281_s3 + $0x10] ss:$8 sm:$0x3] }
  0xdb   : > { %v529_v49 = vpop.permute.xlu1 %528  ;;  %v1177_v6 = vpop.permute.xlu0 %750 }
  0xdc   : > { %v534_v13 = vsel %vm530_vm5, %v529_v49, 0.0  ;;  %v531_v16 = vsel %vm530_vm5, %v527_v55, %v529_v49 }
  0xdd   : > { %v554_v60 = vrot.slane %v534_v13, %v1100_v58  ;;  %v550_v28 = vrot.slane %v531_v16, %v1100_v58  ;;  %v522_v13 = vmul.f32 %v515_v11, %v507_v38 }
  0xdf   : > { %v538_v56 = vpop.permute.xlu1 %537  ;;  %v664_v23 = vpop.permute.xlu0 %663  ;;  %v556_v37 = vmul.f32 %v554_v60, %v1156_v44  ;;  %v555_v47 = vmul.f32 %v550_v28, %v1156_v44 }
  0xe0   : > { %v542_v4 = vsel %vm530_vm5, %v538_v56, 0.0  ;;  %v539_v14 = vsel %vm530_vm5, %v536_v59, %v538_v56 }
  0xe1   : > { %v568_v18 = vrot.slane %v542_v4, %v1100_v58  ;;  %v564_v27 = vrot.slane %v539_v14, %v1100_v58  ;;  %v707_v4 = vrot.slane %v879_v51, %v1100_v58 }
  0xe3   : > { %v1168_v61 = vpop.permute.xlu1 %686  ;;  %v570_v33 = vmul.f32 %v568_v18, %v559_v46  ;;  %v569_v9 = vmul.f32 %v564_v27, %v559_v46 }
  0xe5   : > { %v572_v55 = vadd.f32 %v570_v33, %v556_v37  ;;  %v571_v3 = vadd.f32 %v569_v9, %v555_v47  ;;  %v525_v33 = vadd.f32 %v523_v20, %v1162_v54 }
  0xe7   : > { %v591_v63 = vpop.permute.xlu1 %590  ;;  %v587_v60 = vmul.f32 %v583_v26, %v572_v55 }
  0xe8   : > { %v595_v34 = vsel %vm594_vm6, %v591_v63, %v593_v62  ;;  %v719_v63 = vpop.permute.xlu0 %718 }
  0xe9   : > { %v614_v48 = vrot.slane %v595_v34, %v1100_v58  ;;  %v771_v34 = vrot.slane %v880_v25, %v1100_v58  ;;  %v589_v37 = vadd.f32 %v587_v60, %v525_v33 }
  0xeb   : > { %v600_v0 = vpop.permute.xlu1 %599  ;;  %v619_v14 = vmul.f32 %v614_v48, %v1158_v52 }
  0xec   : > { %v603_v24 = vsel %vm594_vm6, %v600_v0, %v602_v1  ;;  %v634_v1 = vmul.f32 %v632_v40, %v1164_v57 }
  0xed   : > { %v628_v35 = vrot.slane %v603_v24, %v1100_v58 }
  0xee   : > { %v636_v32 = vadd.f32 %v634_v1, %v620_v21 }
  0xef   : > { %v1170_v2 = vpop.permute.xlu1 %736  ;;  %v633_v59 = vmul.f32 %v628_v35, %v1164_v57 }
  0xf0   : > { %v651_v42 = vmul.f32 %v647_v19, %v636_v32 }
  0xf1   : > { %v635_v11 = vadd.f32 %v633_v59, %v619_v14 }
  0xf3   : > { %v655_v15 = vpop.permute.xlu1 %654  ;;  %v650_v9 = vmul.f32 %v643_v39, %v635_v11 }
  0xf7   : > { %v657_v29 = vpop.permute.xlu1 %656 }
  0xf8   : > { %v659_v17 = vsel %vm658_vm7, %v655_v15, %v657_v29  ;;  %v662_v41 = vsel %vm658_vm7, %v657_v29, 0.0  ;;  %v728_v29 = vpop.permute.xlu0 %727 }
  0xf9   : > { %v678_v56 = vrot.slane %v659_v17, %v1100_v58  ;;  %v682_v62 = vrot.slane %v662_v41, %v1100_v58 }
  0xfb   : > { %v666_v50 = vpop.permute.xlu1 %665  ;;  %v683_v27 = vmul.f32 %v678_v56, %v1166_v45  ;;  %v684_v36 = vmul.f32 %v682_v62, %v1166_v45  ;;  %v524_v45 = vadd.f32 %v522_v13, %v1160_v53 }
  0xfc   : > { %v667_v46 = vsel %vm658_vm7, %v664_v23, %v666_v50  ;;  %v670_v49 = vsel %vm658_vm7, %v666_v50, 0.0 }
  0xfd   : > { %v692_v44 = vrot.slane %v667_v46, %v1100_v58  ;;  %v696_v0 = vrot.slane %v670_v49, %v1100_v58 }
  0xff   : > { %v697_v15 = vmul.f32 %v692_v44, %v1168_v61  ;;  %v698_v16 = vmul.f32 %v696_v0, %v1168_v61  ;;  %v721_v18 = vpop.permute.xlu1 %720  ;;  %v586_v61 = vmul.f32 %v579_v22, %v571_v3  ;;  %v775_v22 = vrot.slane %v880_v25, %v1120_v30 }
 0x100   : > { %v723_v24 = vsel %vm722_vm8, %v719_v63, %v721_v18  ;;  %v726_v57 = vsel %vm722_vm8, %v721_v18, 0.0 }
 0x101   : > { %v742_v12 = vrot.slane %v723_v24, %v1100_v58  ;;  %v746_v52 = vrot.slane %v726_v57, %v1100_v58  ;;  %v699_v28 = vadd.f32 %v697_v15, %v683_v27  ;;  %v700_v23 = vadd.f32 %v698_v16, %v684_v36 }
 0x102   : > { %v588_v41 = vadd.f32 %v586_v61, %v524_v45 }
 0x103   : > { %v730_v31 = vpop.permute.xlu1 %729  ;;  %v747_v17 = vmul.f32 %v742_v12, %v1170_v2  ;;  %v748_v54 = vmul.f32 %v746_v52, %v1170_v2  ;;  %v714_v47 = vmul.f32 %v707_v4, %v699_v28  ;;  %v715_v48 = vmul.f32 %v711_v10, %v700_v23  ;;  %v786_v2 = vpop.permute.xlu0 %785 }
 0x104   : > { %v731_v26 = vsel %vm722_vm8, %v728_v29, %v730_v31  ;;  %v734_v35 = vsel %vm722_vm8, %v730_v31, 0.0  ;;  %v652_v51 = vadd.f32 %v650_v9, %v588_v41 }
 0x105   : > { %v756_v38 = vrot.slane %v731_v26, %v1100_v58  ;;  %v760_v40 = vrot.slane %v734_v35, %v1100_v58  ;;  %v653_v58 = vadd.f32 %v651_v42, %v589_v37 }
 0x106   : > { %v716_v39 = vadd.f32 %v714_v47, %v652_v51 }
 0x107   : > { %v761_v43 = vmul.f32 %v756_v38, %v1177_v6  ;;  %v762_v53 = vmul.f32 %v760_v40, %v1177_v6  ;;  %v717_v59 = vadd.f32 %v715_v48, %v653_v58 }
 0x109   : > { %v764_v50 = vadd.f32 %v762_v53, %v748_v54  ;;  %v763_v55 = vadd.f32 %v761_v43, %v747_v17 }
 0x10b   : > { %v778_v46 = vmul.f32 %v771_v34, %v763_v55  ;;  %v779_v49 = vmul.f32 %v775_v22, %v764_v50 }
 0x10d   : > { %v780_v56 = vadd.f32 %v778_v46, %v716_v39  ;;  %v781_v62 = vadd.f32 %v779_v49, %v717_v59 }
 0x10f   : > { %v788_v63 = vadd.f32 %v786_v2, %v780_v56  ;;  %v789_v30 = vadd.f32 %v786_v2, %v781_v62 }
 0x111   : > { %v790_v7 = vsub.f32 0.0, %v788_v63  ;;  %v791_v19 = vsub.f32 0.0, %v789_v30 }
 0x113   : > { %v792_v44 = vmul.f32 1.442695, %v790_v7  ;;  %v794_v6 = vmul.f32 1.442695, %v791_v19 }
 0x115   : > { %939 = vpow2.f32 %v792_v44 }
 0x116   : > { %941 = vpow2.f32 %v794_v6 }
 0x11f   : > { %v940_v0 = vpop.eup %939 }
 0x120   : > { %v942_v1 = vpop.eup %941  ;;  %v796_v3 = vadd.f32 1.0, %v940_v0 }
 0x121   : > { %v797_v4 = vadd.f32 1.0, %v942_v1 }
 0x122   : > { %943 = vrcp.f32 %v796_v3 }
 0x123   : > { %945 = vrcp.f32 %v797_v4 }
 0x12c   : > { %v944_v10 = vpop.eup %943 }
 0x12d   : > { %v946_v13 = vpop.eup %945  ;;  %v800_v14 = vmul.f32 %v944_v10, %v1032_v5 }
 0x12e   : > { %v801_v15 = vmul.f32 %v946_v13, %v1038_v8 }
 0x12f   : > { %v802_v16 = vadd.f32 %v800_v14, %v1032_v5 }
 0x130   : > { %v803_v18 = vadd.f32 %v801_v15, %v1038_v8 }
 0x132   : > { %v806_v20 = vcombine.low %v802_v16, %v803_v18 }
 0x134   : > { %808 = vst [vmem:[%s197_s30] sm:$0xff] %v806_v20 }
 0x135 PF: > { %s14_s15 = sadd.s32 1, %s953_s15  }
 0x136   : > { %p11_p4 = scmp.ge.s32.totalorder %s14_s15, 4  }
 0x138   :  { %13 = sbr.rel (!%p11_p4) target bundleno = 1 (0x1), region = 74 }

</bundles_post_ra>
